<compile_context>
chip_gen: v6e
topology: v6e:2x2x1
jax: 0.10.0
libtpu: 0.0.40
codegen_flags: <defaults>
</compile_context>

<pallas_src>
import functools

import jax
import jax.numpy as jnp
from jax.experimental import pallas as pl
from jax.experimental.pallas import tpu as pltpu

_LANES = 1024            # lane-dense last dim (multiple of 128)
_MAX_BLOCK_ROWS = 256    # 256 * 1024 * 4B = 1 MiB per f32 buffer


def _generalized_relu_kernel(x_ref, o_ref, *, leak, bias, max_value):
    x = x_ref[...]
    if leak is None:
        y = jnp.maximum(x, jnp.zeros_like(x))
    elif 0.0 <= leak < 1.0:
        # LeakyReLU as mul + max (valid for 0 <= leak < 1): one fewer VALU op
        # than cmp + select.
        y = jnp.maximum(x, jnp.asarray(leak, x.dtype) * x)
    else:
        # General leak value: x if x >= 0 else leak * x
        y = jnp.where(x >= 0, x, jnp.asarray(leak, x.dtype) * x)
    y = y + jnp.asarray(bias, x.dtype)
    if max_value is not None:
        y = jnp.minimum(y, jnp.asarray(max_value, x.dtype))
    o_ref[...] = y


def generalized_relu(x, leak=None, bias=0.0, max_value=None):
    """Pallas-backed GeneralizedReLU forward pass.

    Elementwise op, so the wrapper reshapes to a lane-dense (rows, 1024) slab,
    runs a tiled 1-D grid (double-buffered DMA), and reshapes back.
    """
    orig_shape = x.shape
    total = x.size

    # --- flatten to a lane-dense 2-D slab ------------------------------------
    rows = pl.cdiv(total, _LANES)
    if rows <= _MAX_BLOCK_ROWS:
        # Tiny input: single block equal to the full (padded) array extent.
        block_rows = rows
    else:
        block_rows = _MAX_BLOCK_ROWS  # multiple of 8 -> valid sublane tiling

    padded_rows = pl.cdiv(rows, block_rows) * block_rows
    pad = padded_rows * _LANES - total

    flat = x.reshape(-1)
    if pad:
        flat = jnp.pad(flat, (0, pad))
    slab = flat.reshape(padded_rows, _LANES)

    # --- tiled, double-buffered elementwise pass ------------------------------
    kernel = functools.partial(
        _generalized_relu_kernel, leak=leak, bias=bias, max_value=max_value
    )
    out_slab = pl.pallas_call(
        kernel,
        out_shape=jax.ShapeDtypeStruct(slab.shape, slab.dtype),
        grid=(padded_rows // block_rows,),
        in_specs=[pl.BlockSpec((block_rows, _LANES), lambda i: (i, 0))],
        out_specs=pl.BlockSpec((block_rows, _LANES), lambda i: (i, 0)),
        compiler_params=pltpu.CompilerParams(
            dimension_semantics=("parallel",)
        ),
    )(slab)

    out = out_slab.reshape(-1)
    if pad:
        out = out[:total]
    return out.reshape(orig_shape)


def _reference(x, leak=None, bias=0.0, max_value=None):
    y = jnp.where(x >= 0, x, (0.0 if leak is None else leak) * x)
    y = y + bias
    if max_value is not None:
        y = jnp.minimum(y, max_value)
    return y


if __name__ == "__main__":
    key = jax.random.PRNGKey(0)

    # Small NCHW activation tensor, consistent with a conv feature map.
    x = jax.random.normal(key, (2, 4, 16, 16), dtype=jnp.float32) * 3.0

    # Module config: LeakyReLU(0.1) with bias=-0.5 and clamp_max at 6.0.
    leak, bias, max_value = 0.1, -0.5, 6.0

    out = jax.block_until_ready(
        generalized_relu(x, leak=leak, bias=bias, max_value=max_value)
    )
    ref = _reference(x, leak=leak, bias=bias, max_value=max_value)
    assert out.shape == x.shape and out.dtype == x.dtype
    assert jnp.allclose(out, ref, atol=1e-6, rtol=1e-6), "mismatch vs reference"

    # Plain-ReLU / no-clamp configuration (leak=None).
    out2 = jax.block_until_ready(
        generalized_relu(x, leak=None, bias=0.0, max_value=None)
    )
    ref2 = _reference(x, leak=None, bias=0.0, max_value=None)
    assert jnp.allclose(out2, ref2, atol=1e-6, rtol=1e-6), "mismatch (relu)"

    # Larger tensor to exercise the multi-block tiled / padded path.
    key2 = jax.random.PRNGKey(0)
    x_big = jax.random.normal(key2, (8, 16, 60, 130), dtype=jnp.float32) * 3.0
    out3 = jax.block_until_ready(
        generalized_relu(x_big, leak=leak, bias=bias, max_value=max_value)
    )
    ref3 = _reference(x_big, leak=leak, bias=bias, max_value=max_value)
    assert out3.shape == x_big.shape
    assert jnp.allclose(out3, ref3, atol=1e-6, rtol=1e-6), "mismatch (tiled)"

    print("KERNEL_OK")
</pallas_src>

<mosaic_0001>
module attributes {stable_mosaic.version = 11 : i64} {
  func.func @_generalized_relu_kernel(%arg0: i32, %arg1: memref<2x1024xf32, #tpu.memory_space<vmem>>, %arg2: memref<2x1024xf32, #tpu.memory_space<vmem>>) attributes {dimension_semantics = [#tpu.dimension_semantics<parallel>], iteration_bounds = array<i64: 1>, scalar_prefetch = 0 : i64, scratch_operands = 0 : i64, tpu.core_type = #tpu.core_type<tc>, window_params = [{transform_indices = @transform_0, window_bounds = array<i64: 2, 1024>}, {transform_indices = @transform_1, window_bounds = array<i64: 2, 1024>}]} {
    %c0 = arith.constant 0 : index
    %c0_0 = arith.constant 0 : index
    %0 = vector.load %arg1[%c0, %c0_0] : memref<2x1024xf32, #tpu.memory_space<vmem>>, vector<2x1024xf32>
    %cst = arith.constant 1.000000e-01 : f32
    %1 = vector.broadcast %cst : f32 to vector<2x1024xf32>
    %2 = arith.mulf %1, %0 : vector<2x1024xf32>
    %3 = arith.maximumf %0, %2 : vector<2x1024xf32>
    %cst_1 = arith.constant -5.000000e-01 : f32
    %4 = vector.broadcast %cst_1 : f32 to vector<2x1024xf32>
    %5 = arith.addf %3, %4 : vector<2x1024xf32>
    %cst_2 = arith.constant 6.000000e+00 : f32
    %6 = vector.broadcast %cst_2 : f32 to vector<2x1024xf32>
    %7 = arith.minimumf %5, %6 : vector<2x1024xf32>
    %c0_3 = arith.constant 0 : index
    %c0_4 = arith.constant 0 : index
    %8 = vector.load %arg2[%c0_3, %c0_4] : memref<2x1024xf32, #tpu.memory_space<vmem>>, vector<2x1024xf32>
    tpu.vector_store %arg2[%c0_3, %c0_4], %7 {strides = array<i32>} : memref<2x1024xf32, #tpu.memory_space<vmem>>, vector<2x1024xf32>,
    return
  }
  func.func @transform_0(%arg0: i32) -> (i32, i32) {
    %c0_i32 = arith.constant 0 : i32
    %c0_i32_0 = arith.constant 0 : i32
    return %arg0, %c0_i32 : i32, i32
  }
  func.func @transform_1(%arg0: i32) -> (i32, i32) {
    %c0_i32 = arith.constant 0 : i32
    %c0_i32_0 = arith.constant 0 : i32
    return %arg0, %c0_i32 : i32, i32
  }
}

</mosaic_0001>

<bundles_post_ra>
// kernel: tpu_custom_call.1
= control target key start
LH: loop header
LB: loop body
LE: loop exit
PB: predicated region body
PF: predicated region fallthrough
CT: control target
= control target key end

     0   :  { %6 = vsyncpa [#allocation3], 0  ;;  %s112_s0 = inlined_call_operand.hbm [shape: f32[2,1024], index: 0, kind: input, shape index: {}]   ;;  %s113_s1 = inlined_call_operand.hbm [shape: f32[2,1024], index: 1, kind: output, shape index: {}]  }
   0x1   :  { %7 = vsyncpa [#allocation4], 0  ;;  %s94_s6 = smov [#allocation2]  }
   0x2   :  { %s14_s7 = sshll.u32 %s94_s6, 4  ;;  %s15_s7 = int_to_ptr.vmem [resolvable:$true] %s14_s7 }
   0x3   :  { %s58_s8 = scalar_lea.vmem %s15_s7, 256  ;;  %p63_p1 = scmp.lt.s32.totalorder %s15_s7, %s15_s7 }
   0x4   :  { %p59_p0 = scmp.ne.s32.totalorder %s15_s7, %s58_s8  ;;  %p64_p2 = scmp.lt.s32.totalorder %s58_s8, %s58_s8 }
   0x6   :  { %p65_p3 = por %p64_p2, %p63_p1 }
   0x8   :  { %p66_p4 = pnand %p65_p3, %p59_p0 }
   0xa   :  { %69 = shalt.err (!%p66_p4)
}
   0xb   :  { %17 = dma.hbm_to_vmem [thread:$0]  %s112_s0, 256, %s15_s7, [#allocation3]  }
   0xc   :  { %90 = dma.done.wait [#allocation3], 256  }
   0xd   :  { %91 = vsyncadd [#allocation3], 4294967040  ;;  %v21_v0 = vld [vmem:[#allocation2] sm:$0xff]  ;;  %v22_v1 = vld [vmem:[#allocation2 + $0x8] sm:$0xff]  ;;  %s95_s11 = smov [#allocation5]  }
   0xe   :  { %v23_v2 = vmul.f32 0.1, %v21_v0  ;;  %v24_v3 = vmul.f32 0.1, %v22_v1  ;;  %s39_s12 = sshll.u32 %s95_s11, 4  ;;  %s40_s12 = int_to_ptr.vmem [resolvable:$true] %s39_s12 }
   0xf   :  { %s70_s13 = scalar_lea.vmem %s40_s12, 256  ;;  %p75_p6 = scmp.lt.s32.totalorder %s40_s12, %s40_s12 }
  0x10   :  { %v25_v4 = vmax.f32 %v21_v0, %v23_v2  ;;  %v26_v5 = vmax.f32 %v22_v1, %v24_v3  ;;  %p71_p5 = scmp.ne.s32.totalorder %s40_s12, %s70_s13  ;;  %p76_p7 = scmp.lt.s32.totalorder %s70_s13, %s70_s13 }
  0x12   :  { %v27_v6 = vadd.f32 -0.5, %v25_v4  ;;  %v28_v7 = vadd.f32 -0.5, %v26_v5  ;;  %p77_p8 = por %p76_p7, %p75_p6 }
  0x14   :  { %v29_v8 = vmin.f32 %v27_v6, 6.0  ;;  %v30_v9 = vmin.f32 %v28_v7, 6.0  ;;  %p78_p9 = pnand %p77_p8, %p71_p5 }
  0x16   :  { %31 = vst [vmem:[#allocation5] sm:$0xff] %v29_v8  ;;  %32 = vst [vmem:[#allocation5 + $0x8] sm:$0xff] %v30_v9 }
  0x17   :  { %81 = shalt.err (!%p78_p9)
}
  0x18   :  { %42 = dma.vmem_to_hbm [thread:$0]  %s40_s12, 256, %s113_s1, [#allocation4]  }
  0x19   :  { %92 = dma.done.wait [#allocation4], 256  }
  0x1a   :  { %93 = vsyncadd [#allocation4], 4294967040 }
  0x1b   :  { %46 = vsyncpa [#allocation3], 1 }
  0x1c   :  { %47 = vsyncpa [#allocation4], 1 }

</bundles_post_ra>
